<compile_context>
chip_gen: v5e
topology: v5e:2x2
jax: 0.10.0
libtpu: 0.0.40
codegen_flags: <defaults>
</compile_context>

<pallas_src>
import jax
import jax.numpy as jnp
from jax.experimental import pallas as pl
from jax.experimental.pallas import tpu as pltpu


def _linear_kernel(xt_ref, w_ref, b_ref, o_ref):
    # xt_ref: VMEM [IN=2, TILE_B]   (batch on lanes)
    # w_ref : SMEM [2]              (fc1.weight flattened)
    # b_ref : SMEM [1]              (fc1.bias)
    # o_ref : VMEM [OUT=1, TILE_B]
    w0 = w_ref[0]
    w1 = w_ref[1]
    b = b_ref[0]
    x0 = xt_ref[0:1, :]  # (1, TILE_B) static slices: no relayout, pure VPU work
    x1 = xt_ref[1:2, :]
    o_ref[...] = x0 * w0 + x1 * w1 + b


def shallow_net_forward(x, weight, bias, *, tile_b=32768):
    """Pallas equivalent of ShallowNet.forward: self.fc1(x).

    x:      [B, 2]  float32
    weight: [1, 2]  float32   (nn.Linear weight, [out_features, in_features])
    bias:   [1]     float32
    returns [B, 1]  float32
    """
    B, IN = x.shape
    OUT = weight.shape[0]
    assert IN == 2 and OUT == 1, "ShallowNet is Linear(2, 1)"

    lane = 128
    # Cap the batch tile at the (lane-rounded) batch and keep it a multiple of 128.
    b_round = pl.cdiv(B, lane) * lane
    tile_b = min(tile_b, b_round)
    tile_b = pl.cdiv(tile_b, lane) * lane
    b_pad = pl.cdiv(B, tile_b) * tile_b
    grid = (b_pad // tile_b,)

    # Lane-dense slab: [IN, B_pad]; padded columns are sliced off after the call.
    x_t = jnp.pad(x.T, ((0, 0), (0, b_pad - B)))
    w_flat = weight.reshape(IN).astype(jnp.float32)
    b_flat = bias.reshape(OUT).astype(jnp.float32)

    y_t = pl.pallas_call(
        _linear_kernel,
        out_shape=jax.ShapeDtypeStruct((OUT, b_pad), x.dtype),
        grid_spec=pl.GridSpec(
            grid=grid,
            in_specs=[
                # (IN, tile_b): IN==full dim, tile_b multiple of 128 -> valid TPU block.
                pl.BlockSpec((IN, tile_b), lambda i: (0, i)),
                # 3 parameter floats stay in scalar memory.
                pl.BlockSpec(memory_space=pltpu.MemorySpace.SMEM),
                pl.BlockSpec(memory_space=pltpu.MemorySpace.SMEM),
            ],
            out_specs=pl.BlockSpec((OUT, tile_b), lambda i: (0, i)),
        ),
        compiler_params=pltpu.CompilerParams(
            dimension_semantics=("parallel",),
        ),
    )(x_t, w_flat, b_flat)

    return y_t[:, :B].T  # back to the PyTorch [B, OUT] layout


if __name__ == "__main__":
    key = jax.random.PRNGKey(0)
    k_x, k_w, k_b = jax.random.split(key, 3)

    B, IN, OUT = 8, 2, 1
    x = jax.random.normal(k_x, (B, IN), dtype=jnp.float32)

    # Deterministic init mimicking PyTorch U(-1/sqrt(fan_in), 1/sqrt(fan_in)).
    bound = 1.0 / jnp.sqrt(jnp.float32(IN))
    weight = jax.random.uniform(k_w, (OUT, IN), minval=-bound, maxval=bound,
                                dtype=jnp.float32)
    bias = jax.random.uniform(k_b, (OUT,), minval=-bound, maxval=bound,
                              dtype=jnp.float32)

    # Small-batch check.
    y = jax.block_until_ready(shallow_net_forward(x, weight, bias))
    y_ref = x @ weight.T + bias
    assert y.shape == (B, OUT)
    assert jnp.allclose(y, y_ref, atol=1e-5, rtol=1e-5)

    # Multi-tile / remainder-padding check (grid > 1, B not a multiple of the tile).
    B2 = 389
    x2 = jax.random.normal(jax.random.PRNGKey(1), (B2, IN), dtype=jnp.float32)
    y2 = jax.block_until_ready(shallow_net_forward(x2, weight, bias, tile_b=128))
    y2_ref = x2 @ weight.T + bias
    assert y2.shape == (B2, OUT)
    assert jnp.allclose(y2, y2_ref, atol=1e-5, rtol=1e-5)

    print("KERNEL_OK")
</pallas_src>

<mosaic_0001>
module attributes {stable_mosaic.version = 11 : i64} {
  func.func @_linear_kernel(%arg0: i32, %arg1: memref<2x128xf32, #tpu.memory_space<vmem>>, %arg2: memref<2xf32, #tpu.memory_space<smem>>, %arg3: memref<1xf32, #tpu.memory_space<smem>>, %arg4: memref<1x128xf32, #tpu.memory_space<vmem>>) attributes {dimension_semantics = [#tpu.dimension_semantics<parallel>], iteration_bounds = array<i64: 1>, scalar_prefetch = 0 : i64, scratch_operands = 0 : i64, tpu.core_type = #tpu.core_type<tc>, window_params = [{transform_indices = @transform_0, window_bounds = array<i64: 2, 128>}, {transform_indices = @transform_1, window_bounds = array<i64: 2>}, {transform_indices = @transform_2, window_bounds = array<i64: 1>}, {transform_indices = @transform_3, window_bounds = array<i64: 1, 128>}]} {
    %c0 = arith.constant 0 : index
    %0 = memref.load %arg2[%c0] : memref<2xf32, #tpu.memory_space<smem>>
    %c1 = arith.constant 1 : index
    %1 = memref.load %arg2[%c1] : memref<2xf32, #tpu.memory_space<smem>>
    %c0_0 = arith.constant 0 : index
    %2 = memref.load %arg3[%c0_0] : memref<1xf32, #tpu.memory_space<smem>>
    %c0_1 = arith.constant 0 : index
    %c0_2 = arith.constant 0 : index
    %3 = vector.load %arg1[%c0_1, %c0_2] : memref<2x128xf32, #tpu.memory_space<vmem>>, vector<1x128xf32>
    %c1_3 = arith.constant 1 : index
    %c0_4 = arith.constant 0 : index
    %4 = vector.load %arg1[%c1_3, %c0_4] : memref<2x128xf32, #tpu.memory_space<vmem>>, vector<1x128xf32>
    %5 = vector.broadcast %0 : f32 to vector<1x128xf32>
    %6 = arith.mulf %3, %5 : vector<1x128xf32>
    %7 = vector.broadcast %1 : f32 to vector<1x128xf32>
    %8 = arith.mulf %4, %7 : vector<1x128xf32>
    %9 = arith.addf %6, %8 : vector<1x128xf32>
    %10 = vector.broadcast %2 : f32 to vector<1x128xf32>
    %11 = arith.addf %9, %10 : vector<1x128xf32>
    %c0_5 = arith.constant 0 : index
    %c0_6 = arith.constant 0 : index
    %12 = vector.load %arg4[%c0_5, %c0_6] : memref<1x128xf32, #tpu.memory_space<vmem>>, vector<1x128xf32>
    tpu.vector_store %arg4[%c0_5, %c0_6], %11 {strides = array<i32>} : memref<1x128xf32, #tpu.memory_space<vmem>>, vector<1x128xf32>,
    return
  }
  func.func @transform_0(%arg0: i32) -> (i32, i32) {
    %c0_i32 = arith.constant 0 : i32
    %c0_i32_0 = arith.constant 0 : i32
    return %c0_i32, %arg0 : i32, i32
  }
  func.func @transform_1(%arg0: i32) -> i32 {
    %c0_i32 = arith.constant 0 : i32
    %c0_i32_0 = arith.constant 0 : i32
    return %c0_i32 : i32
  }
  func.func @transform_2(%arg0: i32) -> i32 {
    %c0_i32 = arith.constant 0 : i32
    %c0_i32_0 = arith.constant 0 : i32
    return %c0_i32 : i32
  }
  func.func @transform_3(%arg0: i32) -> (i32, i32) {
    %c0_i32 = arith.constant 0 : i32
    %c0_i32_0 = arith.constant 0 : i32
    return %c0_i32, %arg0 : i32, i32
  }
}

</mosaic_0001>

<bundles_post_ra>
// kernel: tpu_custom_call.1
= control target key start
LH: loop header
LB: loop body
LE: loop exit
PB: predicated region body
PF: predicated region fallthrough
CT: control target
= control target key end

     0   :  { %9 = vsyncpa [#allocation5], 0  ;;  %s139_s0 = inlined_call_operand.vmem [shape: f32[2,128], index: 0, kind: input, shape index: {}]   ;;  %s140_s1 = inlined_call_operand.hbm [shape: f32[2], index: 1, kind: input, shape index: {}]   ;;  %s141_s2 = inlined_call_operand.<no memory space> [shape: f32[1], index: 2, kind: input, shape index: {}]   ;;  %s142_s3 = inlined_call_operand.hbm [shape: f32[1,128], index: 3, kind: output, shape index: {}]  }
   0x1   :  { %10 = vsyncpa [#allocation4], 0  ;;  %s18_s14 = sshll.u32 %s140_s1, 4  ;;  %s102_s15 = smov [#allocation3]   ;;  %s19_s14 = int_to_ptr.hbm [resolvable:$true] %s18_s14 }
   0x2   :  { %21 = dma.hbm_to_smem %s19_s14, 16, %s102_s15, [#allocation5]  }
   0x3   :  { %98 = dma.done.wait [#allocation5], 16  }
   0x4   :  { %99 = vsyncadd [#allocation5], 4294967280 }
   0x5   :  { %28 = sfence }
   0x6   :  { %s29_s16 = sld [smem:[#allocation3]]  ;;  %v32_v0 = vld [vmem:[%s139_s0] sm:$0x1]  ;;  %v33_v1 = vld [vmem:[%s139_s0 + $0x1] sm:$0x1]  ;;  %v39_v6 = vstv %s141_s2  ;;  %s103_s23 = smov [#allocation6]  }
   0x7   :  { %s59_s17 = sld [smem:[#allocation3 + $0x1]]  ;;  %s47_s24 = sshll.u32 %s103_s23, 4  ;;  %s48_s24 = int_to_ptr.vmem [resolvable:$true] %s47_s24 }
   0x8   :  { %s49_s27 = sshll.u32 %s142_s3, 4  ;;  %s50_s27 = int_to_ptr.hbm [resolvable:$true] %s49_s27 }
   0xc   :  { %v34_v2 = vstv %s29_s16 }
   0xd   :  { %v35_v3 = vmul.f32 %v34_v2, %v32_v0  ;;  %v36_v4 = vstv %s59_s17 }
   0xe   :  { %v37_v5 = vmul.f32 %v36_v4, %v33_v1 }
  0x10   :  { %v38_v7 = vadd.f32 %v37_v5, %v35_v3 }
  0x12   :  { %v40_v8 = vadd.f32 %v39_v6, %v38_v7 }
  0x14   :  { %41 = vst [vmem:[#allocation6] sm:$0x1] %v40_v8 }
  0x15   :  { %52 = dma.vmem_to_hbm [thread:$0]  %s48_s24, 16, %s50_s27, [#allocation4]  }
  0x16   :  { %100 = dma.done.wait [#allocation4], 16  }
  0x17   :  { %101 = vsyncadd [#allocation4], 4294967280 }
  0x18   :  { %57 = vsyncpa [#allocation4], 1 }
  0x19   :  { %58 = vsyncpa [#allocation5], 1 }

</bundles_post_ra>
